<compile_context>
chip_gen: v5e
topology: v5e:2x2
jax: 0.10.0
libtpu: 0.0.40
codegen_flags: <defaults>
</compile_context>

<pallas_src>
import functools

import numpy as np
import jax
import jax.numpy as jnp
from jax.experimental import pallas as pl
from jax.experimental.pallas import tpu as pltpu


# ---------------------------------------------------------------------------
# Pallas kernel: out[Cout, tm] = (relu)(W[Cout, K] @ X[K, tm] + b[Cout, 1])
# ---------------------------------------------------------------------------
def _mm_bias_kernel(x_ref, w_ref, b_ref, o_ref, *, relu):
    acc = jnp.dot(w_ref[...], x_ref[...], preferred_element_type=jnp.float32)
    acc = acc + b_ref[...]                      # (Cout, tm) + (Cout, 1) broadcast
    if relu:
        acc = jnp.maximum(acc, 0.0)
    o_ref[...] = acc.astype(o_ref.dtype)


def _pick_tm(M):
    for tm in (1024, 512, 256, 128):
        if M % tm == 0:
            return tm
    return M


def _matmul_bias(xT, wT, b, *, relu):
    """xT: (K, M) bf16, wT: (Cout, K) bf16, b: (Cout,) f32 -> (Cout, M) f32."""
    K, M = xT.shape
    Cout = wT.shape[0]
    tm = _pick_tm(M)
    b2 = b.reshape(Cout, 1).astype(jnp.float32)
    kern = functools.partial(_mm_bias_kernel, relu=relu)
    return pl.pallas_call(
        kern,
        out_shape=jax.ShapeDtypeStruct((Cout, M), jnp.float32),
        grid=(M // tm,),
        in_specs=[
            pl.BlockSpec((K, tm), lambda i: (0, i)),       # activations tile
            pl.BlockSpec((Cout, K), lambda i: (0, 0)),     # weights (resident)
            pl.BlockSpec((Cout, 1), lambda i: (0, 0)),     # bias (resident)
        ],
        out_specs=pl.BlockSpec((Cout, tm), lambda i: (0, i)),
        compiler_params=pltpu.CompilerParams(
            dimension_semantics=("parallel",),             # sharded across TCs on v7x
        ),
    )(xT, wT, b2)


# ---------------------------------------------------------------------------
# Conv3d(k=3, p=1) + ReLU, channel-major, via one folded-K matmul per M tile
# ---------------------------------------------------------------------------
def _im2col_3x3x3(x_cm):
    """x_cm: (C, N, D, H, W) -> (27*C, N*D*H*W), rows ordered (kd, kh, kw, c)."""
    C, N, D, H, W = x_cm.shape
    xp = jnp.pad(x_cm, ((0, 0), (0, 0), (1, 1), (1, 1), (1, 1)))
    taps = []
    for kd in range(3):
        for kh in range(3):
            for kw in range(3):
                taps.append(xp[:, :, kd:kd + D, kh:kh + H, kw:kw + W].reshape(C, -1))
    return jnp.concatenate(taps, axis=0)


def conv3x3x3_relu_cm(x_cm, w, b):
    """x_cm: (Cin, N, D, H, W); w: (3,3,3,Cin,Cout) DHWIO; b: (Cout,).
    Returns (Cout, N, D, H, W) float32."""
    Cin, N, D, H, W = x_cm.shape
    Cout = w.shape[-1]
    K = 27 * Cin
    xT = _im2col_3x3x3(x_cm).astype(jnp.bfloat16)       # (K, M)   bf16 activations
    wT = w.reshape(K, Cout).T.astype(jnp.bfloat16)      # (Cout,K) bf16 weights
    out = _matmul_bias(xT, wT, b, relu=True)            # (Cout, M) f32
    return out.reshape(Cout, N, D, H, W)


def double_conv_cm(x_cm, w1, b1, w2, b2):
    x = conv3x3x3_relu_cm(x_cm, w1, b1)
    return conv3x3x3_relu_cm(x, w2, b2)


def maxpool2_cm(x_cm):
    """MaxPool3d(kernel=2, stride=2), channel-major. Thin JAX glue."""
    C, N, D, H, W = x_cm.shape
    x = x_cm.reshape(C, N, D // 2, 2, H // 2, 2, W // 2, 2)
    return x.max(axis=(3, 5, 7))


# ---------------------------------------------------------------------------
# Patch embedding: Conv3d(kernel=grid, stride=grid) == per-patch matmul
# ---------------------------------------------------------------------------
def patch_embed_cm(x_cm, w, b, grid_size):
    """x_cm: (C, N, D, H, W); w: (gd, gh, gw, C, hidden); b: (hidden,).
    Returns (N, P, hidden) tokens, P enumerating (pd, ph, pw) row-major."""
    C, N, D, H, W = x_cm.shape
    gd, gh, gw = grid_size
    Pd, Ph, Pw = D // gd, H // gh, W // gw
    hidden = w.shape[-1]
    K = gd * gh * gw * C
    xr = x_cm.reshape(C, N, Pd, gd, Ph, gh, Pw, gw)
    xT = jnp.transpose(xr, (3, 5, 7, 0, 1, 2, 4, 6)).reshape(K, N * Pd * Ph * Pw)
    wT = w.reshape(K, hidden).T
    out = _matmul_bias(xT.astype(jnp.bfloat16), wT.astype(jnp.bfloat16), b,
                       relu=False)                       # (hidden, N*P)
    P = Pd * Ph * Pw
    return jnp.transpose(out.reshape(hidden, N, P), (1, 2, 0))


# ---------------------------------------------------------------------------
# Embeddings.forward
# ---------------------------------------------------------------------------
def embeddings_forward(x_ncdhw, params, grid_size):
    # NCDHW -> channel-major (C, N, D, H, W); everything stays channel-major.
    x_cm = jnp.transpose(x_ncdhw, (1, 0, 2, 3, 4))
    # CNNEncoder: inc -> down1 -> down2
    x_cm = double_conv_cm(x_cm, *params["inc"])
    x_cm = double_conv_cm(maxpool2_cm(x_cm), *params["down1"])
    x_cm = double_conv_cm(maxpool2_cm(x_cm), *params["down2"])
    # patch_embed + flatten(-3) + transpose(-2, -1)
    tokens = patch_embed_cm(x_cm, params["pe_w"], params["pe_b"], grid_size)
    # class token concat + positional embedding (Dropout is unused in forward)
    N, _, hid = tokens.shape
    cls = jnp.broadcast_to(params["class_token"], (N, 1, hid))
    tokens = jnp.concatenate([cls, tokens], axis=1)
    return tokens + params["pos_emb"]


# ---------------------------------------------------------------------------
# Pure-JAX reference (f32, lax.conv) for correctness checking
# ---------------------------------------------------------------------------
def _ref_conv3_relu(x_ndhwc, w, b):
    y = jax.lax.conv_general_dilated(
        x_ndhwc, w, window_strides=(1, 1, 1), padding="SAME",
        dimension_numbers=("NDHWC", "DHWIO", "NDHWC"))
    return jnp.maximum(y + b, 0.0)


def _ref_maxpool2(x_ndhwc):
    N, D, H, W, C = x_ndhwc.shape
    return x_ndhwc.reshape(N, D // 2, 2, H // 2, 2, W // 2, 2, C).max(axis=(2, 4, 6))


def _ref_embeddings(x_ncdhw, params, grid_size):
    x = jnp.transpose(x_ncdhw, (0, 2, 3, 4, 1))          # NDHWC
    w1, b1, w2, b2 = params["inc"]
    x = _ref_conv3_relu(x, w1, b1); x = _ref_conv3_relu(x, w2, b2)
    w1, b1, w2, b2 = params["down1"]
    x = _ref_maxpool2(x); x = _ref_conv3_relu(x, w1, b1); x = _ref_conv3_relu(x, w2, b2)
    w1, b1, w2, b2 = params["down2"]
    x = _ref_maxpool2(x); x = _ref_conv3_relu(x, w1, b1); x = _ref_conv3_relu(x, w2, b2)
    y = jax.lax.conv_general_dilated(
        x, params["pe_w"], window_strides=grid_size, padding="VALID",
        dimension_numbers=("NDHWC", "DHWIO", "NDHWC")) + params["pe_b"]
    N, Dp, Hp, Wp, hid = y.shape
    tok = y.reshape(N, Dp * Hp * Wp, hid)
    cls = jnp.broadcast_to(params["class_token"], (N, 1, hid))
    tok = jnp.concatenate([cls, tok], axis=1)
    return tok + params["pos_emb"]


if __name__ == "__main__":
    # Small config consistent with Embeddings:
    #   n_channels=1, encoder_channels=(4, 8, 16), hidden_size=32,
    #   patches.grid=(2,2,2), img_size=(16,16,16), down_factor=2.
    N, n_channels = 2, 1
    enc = (4, 8, 16)
    hidden = 32
    grid_size = (2, 2, 2)
    D = H = W = 16
    down_factor = 2

    key = jax.random.PRNGKey(0)
    keys = jax.random.split(key, 12)

    def conv_init(k, cin, cout):
        kw, kb = jax.random.split(k)
        w = jax.random.normal(kw, (3, 3, 3, cin, cout), jnp.float32) / jnp.sqrt(27.0 * cin)
        b = 0.1 * jax.random.normal(kb, (cout,), jnp.float32)
        return w, b

    params = {
        "inc": (*conv_init(keys[0], n_channels, enc[0]),
                *conv_init(keys[1], enc[0], enc[0])),
        "down1": (*conv_init(keys[2], enc[0], enc[1]),
                  *conv_init(keys[3], enc[1], enc[1])),
        "down2": (*conv_init(keys[4], enc[1], enc[2]),
                  *conv_init(keys[5], enc[2], enc[2])),
    }
    pe_fan = enc[2] * grid_size[0] * grid_size[1] * grid_size[2]
    params["pe_w"] = jax.random.normal(
        keys[6], (*grid_size, enc[2], hidden), jnp.float32) / jnp.sqrt(float(pe_fan))
    params["pe_b"] = 0.1 * jax.random.normal(keys[7], (hidden,), jnp.float32)

    num_patches = ((D // (2 ** down_factor * grid_size[0]))
                   * (H // (2 ** down_factor * grid_size[1]))
                   * (W // (2 ** down_factor * grid_size[2])))
    params["class_token"] = jnp.zeros((1, 1, hidden), jnp.float32)
    params["pos_emb"] = jax.random.normal(keys[8], (1, num_patches + 1, hidden),
                                          jnp.float32)

    x = jax.random.normal(keys[9], (N, n_channels, D, H, W), jnp.float32)

    out = embeddings_forward(x, params, grid_size)
    out = jax.block_until_ready(out)
    assert out.shape == (N, num_patches + 1, hidden), out.shape

    ref = jax.block_until_ready(_ref_embeddings(x, params, grid_size))
    np.testing.assert_allclose(np.asarray(out), np.asarray(ref), rtol=3e-2, atol=3e-2)

    print("KERNEL_OK")
</pallas_src>

<mosaic_0001>
module attributes {stable_mosaic.version = 11 : i64} {
  func.func @_mm_bias_kernel(%arg0: i32, %arg1: memref<27x1024xbf16, #tpu.memory_space<vmem>>, %arg2: memref<4x27xbf16, #tpu.memory_space<vmem>>, %arg3: memref<4x1xf32, #tpu.memory_space<vmem>>, %arg4: memref<4x1024xf32, #tpu.memory_space<vmem>>) attributes {dimension_semantics = [#tpu.dimension_semantics<parallel>], iteration_bounds = array<i64: 8>, scalar_prefetch = 0 : i64, scratch_operands = 0 : i64, tpu.core_type = #tpu.core_type<tc>, window_params = [{transform_indices = @transform_0, window_bounds = array<i64: 27, 1024>}, {pipeline_mode = #tpu.pipeline_mode<synchronous>, transform_indices = @transform_1, window_bounds = array<i64: 4, 27>}, {pipeline_mode = #tpu.pipeline_mode<synchronous>, transform_indices = @transform_2, window_bounds = array<i64: 4, 1>}, {transform_indices = @transform_3, window_bounds = array<i64: 4, 1024>}]} {
    %c0 = arith.constant 0 : index
    %c0_0 = arith.constant 0 : index
    %0 = vector.load %arg2[%c0, %c0_0] : memref<4x27xbf16, #tpu.memory_space<vmem>>, vector<4x27xbf16>
    %c0_1 = arith.constant 0 : index
    %c0_2 = arith.constant 0 : index
    %1 = vector.load %arg1[%c0_1, %c0_2] : memref<27x1024xbf16, #tpu.memory_space<vmem>>, vector<27x1024xbf16>
    %cst = arith.constant dense<0.000000e+00> : vector<4x1024xf32>
    %2 = tpu.matmul %0, %1, %cst {dimension_numbers = #tpu.dot_dimension_numbers<[1], [0], [0], [1], [0, 0, 1, 1], [], []>} : vector<4x27xbf16>, vector<27x1024xbf16>, vector<4x1024xf32> -> vector<4x1024xf32>
    %c0_3 = arith.constant 0 : index
    %c0_4 = arith.constant 0 : index
    %3 = vector.load %arg3[%c0_3, %c0_4] : memref<4x1xf32, #tpu.memory_space<vmem>>, vector<4x1xf32>
    %4 = vector.broadcast %3 : vector<4x1xf32> to vector<4x1024xf32>
    %5 = arith.addf %2, %4 : vector<4x1024xf32>
    %cst_5 = arith.constant 0.000000e+00 : f32
    %6 = vector.broadcast %cst_5 : f32 to vector<4x1024xf32>
    %7 = arith.maximumf %5, %6 : vector<4x1024xf32>
    %c0_6 = arith.constant 0 : index
    %c0_7 = arith.constant 0 : index
    %8 = vector.load %arg4[%c0_6, %c0_7] : memref<4x1024xf32, #tpu.memory_space<vmem>>, vector<4x1024xf32>
    tpu.vector_store %arg4[%c0_6, %c0_7], %7 {strides = array<i32>} : memref<4x1024xf32, #tpu.memory_space<vmem>>, vector<4x1024xf32>,
    return
  }
  func.func @transform_0(%arg0: i32) -> (i32, i32) {
    %c0_i32 = arith.constant 0 : i32
    %c0_i32_0 = arith.constant 0 : i32
    return %c0_i32, %arg0 : i32, i32
  }
  func.func @transform_1(%arg0: i32) -> (i32, i32) {
    %c0_i32 = arith.constant 0 : i32
    %c0_i32_0 = arith.constant 0 : i32
    %c0_i32_1 = arith.constant 0 : i32
    return %c0_i32, %c0_i32_0 : i32, i32
  }
  func.func @transform_2(%arg0: i32) -> (i32, i32) {
    %c0_i32 = arith.constant 0 : i32
    %c0_i32_0 = arith.constant 0 : i32
    %c0_i32_1 = arith.constant 0 : i32
    return %c0_i32, %c0_i32_0 : i32, i32
  }
  func.func @transform_3(%arg0: i32) -> (i32, i32) {
    %c0_i32 = arith.constant 0 : i32
    %c0_i32_0 = arith.constant 0 : i32
    return %c0_i32, %arg0 : i32, i32
  }
}

</mosaic_0001>

<bundles_post_ra>
// kernel: tpu_custom_call.1
= control target key start
LH: loop header
LB: loop body
LE: loop exit
PB: predicated region body
PF: predicated region fallthrough
CT: control target
= control target key end

     0   :  { %8 = vsyncpa [#allocation3], 0  ;;  %s1007_s0 = inlined_call_operand.hbm [shape: bf16[27,8192], index: 0, kind: input, shape index: {}]   ;;  %s1008_s1 = inlined_call_operand.vmem [shape: bf16[4,27], index: 1, kind: input, shape index: {}]   ;;  %s1009_s2 = inlined_call_operand.vmem [shape: f32[4,1], index: 2, kind: input, shape index: {}]   ;;  %s1010_s3 = inlined_call_operand.hbm [shape: f32[4,8192], index: 3, kind: output, shape index: {}]  }
   0x1   :  { %10 = vsyncpa [#allocation3 + $0x1], 0 }
   0x2   :  { %11 = vsyncpa [#allocation4], 0 }
   0x3   :  { %13 = vsyncpa [#allocation4 + $0x1], 0  ;;  %s824_s12 = smov 0   ;;  %s826_s13 = smov 0  }
   0x4   :  { %s828_s14 = smov 0   ;;  %s830_s15 = smov 0  }
   0x5 LB: > { %s845_s16 = sadd.s32 4294967295, %s797_s15   ;;  %s545_s17 = sadd.s32 4294967294, %s797_s15   ;;  %s797_s15 = sphi %s830_s15, %s1019_s15   ;;  %s793_s14 = sphi %s828_s14, %s1018_s14   ;;  %s789_s13 = sphi %s826_s13, %s1017_s13   ;;  %s785_s12 = sphi %s824_s12, %s1016_s12  }
   0x6   : > { %s849_s18 = sadd.s32 1, %s797_s15   ;;  %s26_s19 = sadd.s32 1, %s793_s14 }
   0x7   : > { %s23_s20 = ssub.s32 %s797_s15, %s849_s18  ;;  %p33_p0 = scmp.ne.s32.totalorder %s793_s14, %s789_s13 }
   0x8   : > { %p24_p1 = scmp.eq.s32.totalorder %s23_s20, 0  ;;  %p34_p2 = scmp.eq.s32.totalorder %s797_s15, 0 }
   0x9   : > { %p39_p3 = scmp.ne.s32.totalorder %s789_s13, %s785_s12  ;;  %p40_p4 = scmp.eq.s32.totalorder %s845_s16, 0 }
   0xa   : > { %s861_s21 = scalar_select %p24_p1, %s793_s14, %s26_s19  }
   0xb   : > { %p863_p5 = por %p34_p2, %p33_p0  ;;  %p867_p6 = por %p40_p4, %p39_p3 }
   0xc   : > { %p105_p7 = scmp.eq.s32.totalorder %s845_s16, 7  ;;  %p111_p8 = scmp.eq.s32.totalorder %s545_s17, 7 }
   0xd   : > { %p661_p9 = scmp.lt.s32.totalorder %s797_s15, 8  ;;  %s137_s26 = sand.u32 1, %s793_s14  }
   0xe   : > { %p873_p10 = por %p105_p7, %p33_p0  ;;  %p877_p11 = por %p111_p8, %p39_p3 }
   0xf   : > { %s631_s27 = sshll.u32 %s797_s15, 5  ;;  %s548_s28 = sshll.u32 %s137_s26, 7 }
  0x10   : > { %s146_s4 = scalar_lea.hbm %s1007_s0, %s631_s27  ;;  %s141_s6 = scalar_lea.vmem [#allocation2], %s548_s28 }
  0x11   : > { %s147_s5 = sshll.u32 %s146_s4, 4  ;;  %s149_s7 = sshll.u32 %s141_s6, 4  ;;  %s148_s5 = int_to_ptr.hbm [resolvable:$true] %s147_s5  ;;  %s150_s7 = int_to_ptr.vmem [resolvable:$true] %s149_s7 }
  0x12   : > { %p888_p12 = pnand %p661_p9, %p863_p5  ;;  %p551_p13 = scmp.ge.s32.totalorder %s797_s15, 1 }
  0x13   : > { %s138_s9 = scalar_lea.sflag [#allocation3], %s137_s26  ;;  %s701_s10 = sshra.s32 %s148_s5, 4  ;;  %s702_s10 = int_to_ptr.hbm [resolvable:$true] %s701_s10 }
  0x14   : > { %s703_s11 = scalar_lea.hbm %s702_s10, 128  ;;  %p705_p1 = pneg %p888_p12 }
  0x15   : > { %p704_p0 = scmp.ne.s32.totalorder %s702_s10, %s703_s11  ;;  %s708_s20 = scalar_lea.hbm %s1007_s0, 1024 }
  0x16   : > { %p709_p4 = scmp.lt.s32.totalorder %s702_s10, %s1007_s0  ;;  %p710_p5 = scmp.lt.s32.totalorder %s708_s20, %s703_s11 }
  0x17   : > { %p706_p2 = pnand %p705_p1, %p704_p0 }
  0x18   : > { %p711_p7 = por %p710_p5, %p709_p4 }
  0x19   : > { %p707_p3 = pneg %p706_p2 }
  0x1b   : > { %p712_p8 = pnand %p711_p7, %p707_p3 }
  0x1d   : > { %715 = shalt.err (!%p712_p8)
}
  0x1e   : > { %s799_s26 = smov 4096   ;;  %s800_s28 = smov 512  }
  0x1f   : > { %s801_s29 = smov 32   ;;  %p157_p9 = scmp.lt.s32.totalorder %s797_s15, 9 }
  0x20   : > { %656 = dma.hbm_to_vmem [thread:$0]  (!%p888_p12), %s148_s5, 2048, %s150_s7, %s138_s9, %s799_s26, %s800_s28, %s801_s29  }
  0x21   : > { %p158_p0 = pnand %p551_p13, %p157_p9 }
  0x22   : > { %s907_s30 = sand.u32 (!%p158_p0), 1, %s789_s13  }
  0x23   : > { %161 = sbr.rel (%p158_p0) target bundleno = 215 (0xd7), region = 32  ;;  %s552_s4 = sshll.u32 (!%p158_p0), %s907_s30, 7 }
  0x24   : > { %s164_s6 = scalar_lea.sflag (!%p158_p0), [#allocation3], %s907_s30  ;;  %s911_s10 = scalar_lea.vmem (!%p158_p0), [#allocation2], %s552_s4 }
  0x28   : > { %776 = dma.done.wait (%p867_p6), %s164_s6, 2048  }
  0x29   : > { %778 = vsyncadd (%p867_p6), %s164_s6, 4294965248  ;;  %vm293_vm0 = vcmask 1044480   ;;  %v802_v0 = vmov 0   ;;  %vm294_vm1 = vcmask 1045504   ;;  %v803_v1 = vmov 65535   ;;  %s553_s9 = sshll.u32 %s907_s30, 5 }
  0x2a   : > { %700 = vset.pattern.permute.xlu0 %v802_v0  ;;  %v295_v2 = vsel %vm293_vm0, 4294967295, %v803_v1  ;;  %v588_v4 = vld [vmem:[%s911_s10 + $0x40] sm:$0xf]  ;;  %v640_v6 = vld [vmem:[%s911_s10 + $0x44] sm:$0xf]  ;;  %vm289_vm2 = vcmask 220160  }
  0x2b   : > { %v296_v3 = vsel %vm294_vm1, %v295_v2, 0  ;;  %v644_v5 = vld [vmem:[%s911_s10 + $0x5c] sm:$0x30]  ;;  %v590_v8 = vld [vmem:[%s911_s10 + $0x60] sm:$0x30]  ;;  %vm445_vm3 = vcmask 1043456  }
  0x2c   : > { %v589_v7 = vor.u32 %v644_v5, %v588_v4  ;;  %v596_v9 = vld [vmem:[%s911_s10 + $0x48] sm:$0xf]  ;;  %v593_v11 = vor.u32 %v640_v6, %v590_v8  ;;  %v641_v13 = vld [vmem:[%s911_s10 + $0x4c] sm:$0xf]  ;;  %v556_v15 = vld [vmem:[%s911_s10] sm:$0xf] }
  0x2d   : > { %v645_v10 = vld [vmem:[%s911_s10 + $0x64] sm:$0x30]  ;;  %v598_v14 = vld [vmem:[%s911_s10 + $0x68] sm:$0x30]  ;;  %v636_v18 = vld [vmem:[%s911_s10 + $0x1c] sm:$0xf0] }
  0x2e   : > { %v597_v12 = vor.u32 %v645_v10, %v596_v9  ;;  %v298_v16 = vand.u32 %v589_v7, %v296_v3  ;;  %v601_v17 = vor.u32 %v641_v13, %v598_v14  ;;  %v632_v19 = vld [vmem:[%s911_s10 + $0x4] sm:$0xf]  ;;  %v301_v21 = vand.u32 %v593_v11, %v296_v3  ;;  %v564_v23 = vld [vmem:[%s911_s10 + $0x8] sm:$0xf]  ;;  %v633_v25 = vld [vmem:[%s911_s10 + $0xc] sm:$0xf] }
  0x2f   : > { %v558_v20 = vld [vmem:[%s911_s10 + $0x20] sm:$0xf0]  ;;  %v637_v24 = vld [vmem:[%s911_s10 + $0x24] sm:$0xf0]  ;;  %v557_v27 = vor.u32 %v636_v18, %v556_v15  ;;  %v566_v28 = vld [vmem:[%s911_s10 + $0x28] sm:$0xf0] }
  0x30   : > { %v304_v22 = vand.u32 %v597_v12, %v296_v3  ;;  %327 = vmatpush.bf16.msra.mxu0 %v298_v16  ;;  %v307_v26 = vand.u32 %v601_v17, %v296_v3  ;;  %v643_v29 = vld [vmem:[%s911_s10 + $0x5c] sm:$0xf]  ;;  %340 = vmatpush.bf16.msra.mxu1 %v301_v21  ;;  %v561_v30 = vor.u32 %v632_v19, %v558_v20  ;;  %v612_v33 = vld [vmem:[%s911_s10 + $0x58] sm:$0xf]  ;;  %v642_v38 = vld [vmem:[%s911_s10 + $0x54] sm:$0xf] }
  0x31   : > { %v565_v31 = vor.u32 %v637_v24, %v564_v23  ;;  %v614_v32 = vld [vmem:[%s911_s10 + $0x78] sm:$0x30]  ;;  %v647_v34 = vld [vmem:[%s911_s10 + $0x74] sm:$0x30]  ;;  %v569_v35 = vor.u32 %v633_v25, %v566_v28  ;;  %v606_v39 = vld [vmem:[%s911_s10 + $0x70] sm:$0x30] }
  0x32   : > { %353 = vmatpush.bf16.msra.mxu2 %v304_v22  ;;  %366 = vmatpush.bf16.msra.mxu3 %v307_v26  ;;  %v617_v36 = vor.u32 %v643_v29, %v614_v32  ;;  %v613_v37 = vor.u32 %v647_v34, %v612_v33  ;;  %v604_v40 = vld [vmem:[%s911_s10 + $0x50] sm:$0xf]  ;;  %v194_v41 = vld [vmem:[%s1008_s1] sm:$0x3]  ;;  %v609_v42 = vor.u32 %v642_v38, %v606_v39  ;;  %v635_v44 = vld [vmem:[%s911_s10 + $0x1c] sm:$0xf] }
  0x33   : > { %v646_v43 = vld [vmem:[%s911_s10 + $0x6c] sm:$0x30]  ;;  %v582_v48 = vld [vmem:[%s911_s10 + $0x38] sm:$0xf0]  ;;  %v580_v49 = vld [vmem:[%s911_s10 + $0x18] sm:$0xf] }
  0x34   : > { %328 = vmatpush.bf16.msra.mxu0 %v557_v27  ;;  %v319_v45 = vand.u32 %v617_v36, %v296_v3  ;;  %v316_v46 = vand.u32 %v613_v37, %v296_v3  ;;  %v605_v47 = vor.u32 %v646_v43, %v604_v40  ;;  %v639_v50 = vld [vmem:[%s911_s10 + $0x34] sm:$0xf0]  ;;  %341 = vmatpush.bf16.msra.mxu1 %v561_v30  ;;  %v634_v54 = vld [vmem:[%s911_s10 + $0x14] sm:$0xf]  ;;  %v572_v57 = vld [vmem:[%s911_s10 + $0x10] sm:$0xf] }
  0x35   : > { %v313_v51 = vand.u32 %v609_v42, %v296_v3  ;;  %v581_v53 = vor.u32 %v639_v50, %v580_v49  ;;  %v574_v55 = vld [vmem:[%s911_s10 + $0x30] sm:$0xf0]  ;;  %v585_v56 = vor.u32 %v635_v44, %v582_v48  ;;  %v638_v58 = vld [vmem:[%s911_s10 + $0x2c] sm:$0xf0]  ;;  %v211_v59 = vld [vmem:[%s1009_s2] sm:$0xf] }
  0x36   : > { %354 = vmatpush.bf16.msra.mxu2 %v565_v31  ;;  %367 = vmatpush.bf16.msra.mxu3 %v569_v35  ;;  %v310_v52 = vand.u32 %v605_v47, %v296_v3  ;;  %v577_v60 = vor.u32 %v634_v54, %v574_v55  ;;  %v573_v61 = vor.u32 %v638_v58, %v572_v57  ;;  %s965_s11 = scalar_lea.vmem [#allocation5], %s553_s9  ;;  %s648_s17 = sshll.u32 %s845_s16, 5 }
  0x37   : > { %618 = vmatmul.msk.bf16.vlgmr.msra.gmra.mxu0 %vm289_vm2, %v194_v41  ;;  %619 = vmatmul.msk.bf16.vlgmr.msra.gmra.mxu1 %vm289_vm2, %v194_v41  ;;  %s470_s22 = scalar_lea.hbm %s1010_s3, %s648_s17  ;;  %s472_s27 = sshll.u32 %s965_s11, 4  ;;  %s473_s27 = int_to_ptr.vmem [resolvable:$true] %s472_s27 }
  0x38   : > { %392 = vmatpush.bf16.msrb.mxu1 %v313_v51  ;;  %379 = vmatpush.bf16.msrb.mxu0 %v310_v52  ;;  %s474_s16 = sshll.u32 %s470_s22, 4  ;;  %s459_s26 = scalar_lea.sflag [#allocation4], %s907_s30  ;;  %s475_s16 = int_to_ptr.hbm [resolvable:$true] %s474_s16 }
  0x39   : > { %620 = vmatmul.msk.bf16.vlgmr.msra.gmra.mxu2 %vm289_vm2, %v194_v41  ;;  %621 = vmatmul.msk.bf16.vlgmr.msra.gmra.mxu3 %vm289_vm2, %v194_v41  ;;  %s745_s28 = sshra.s32 %s475_s16, 4  ;;  %s751_s10 = scalar_lea.hbm %s1010_s3, 256  ;;  %s746_s28 = int_to_ptr.hbm [resolvable:$true] %s745_s28 }
  0x3a   : > { %405 = vmatpush.bf16.msrb.mxu2 %v316_v46  ;;  %418 = vmatpush.bf16.msrb.mxu3 %v319_v45  ;;  %s747_s29 = scalar_lea.hbm %s746_s28, 32  ;;  %p752_p1 = scmp.lt.s32.totalorder %s746_s28, %s1010_s3 }
  0x3b   : > { %214 = vperm.xlu0 %700, %v211_v59   ;;  %p748_p6 = scmp.ne.s32.totalorder %s746_s28, %s747_s29  ;;  %p753_p2 = scmp.lt.s32.totalorder %s751_s10, %s747_s29 }
  0x3c   : > { %393 = vmatpush.bf16.msrb.mxu1 %v577_v60  ;;  %380 = vmatpush.bf16.msrb.mxu0 %v573_v61 }
  0x3d   : > { %p749_p12 = pnand %p748_p6, %p873_p10  ;;  %p754_p3 = por %p753_p2, %p752_p1 }
  0x3e   : > { %406 = vmatpush.bf16.msrb.mxu2 %v581_v53  ;;  %419 = vmatpush.bf16.msrb.mxu3 %v585_v56 }
  0x3f   : > { %p750_p13 = pneg %p749_p12 }
  0x41   : > { %p755_p4 = pnand %p754_p3, %p750_p13 }
  0x47   : > { %622 = vmatmul.msk.bf16.vlgmr.msrb.gmra.mxu0 %vm289_vm2, %v194_v41  ;;  %623 = vmatmul.msk.bf16.vlgmr.msrb.gmra.mxu1 %vm289_vm2, %v194_v41 }
  0x49   : > { %624 = vmatmul.msk.bf16.vlgmr.msrb.gmra.mxu2 %vm289_vm2, %v194_v41  ;;  %625 = vmatmul.msk.bf16.vlgmr.msrb.gmra.mxu3 %vm289_vm2, %v194_v41 }
  0xad   : > { %v215_v62 = vpop.permute.xlu0 %214 }
  0xb4   : > { %v330_v63 = vpop.f32.mrf.mxu0  ;;  %v343_v0 = vpop.f32.mrf.mxu1 }
  0xb5   : > { %v331_v1 = vadd.f32 %v330_v63, %v215_v62  ;;  %v344_v2 = vadd.f32 %v343_v0, %v215_v62 }
  0xb7   : > { %v425_v3 = vmax.f32 %v331_v1, 0.0  ;;  %v426_v4 = vmax.f32 %v344_v2, 0.0 }
  0xb9   : > { %v441_v5 = vrot.slane %v426_v4, 4 }
  0xbb   : > { %v446_v9 = vsel %vm445_vm3, %v425_v3, %v441_v5 }
  0xbc   : > { %v356_v6 = vpop.f32.mrf.mxu2  ;;  %v369_v8 = vpop.f32.mrf.mxu3  ;;  %454 = vst [vmem:[%s965_s11] sm:$0xff] %v446_v9 }
  0xbd   : > { %v357_v7 = vadd.f32 %v356_v6, %v215_v62  ;;  %v332_v10 = vpop.f32.mrf.mxu0  ;;  %v370_v11 = vadd.f32 %v369_v8, %v215_v62  ;;  %v345_v12 = vpop.f32.mrf.mxu1 }
  0xbf   : > { %v427_v13 = vmax.f32 %v357_v7, 0.0  ;;  %v428_v14 = vmax.f32 %v370_v11, 0.0 }
  0xc1   : > { %v442_v15 = vrot.slane %v428_v14, 4 }
  0xc3   : > { %v447_v16 = vsel %vm445_vm3, %v427_v13, %v442_v15 }
  0xc4   : > { %v358_v17 = vpop.f32.mrf.mxu2  ;;  %455 = vst [vmem:[%s965_s11 + $0x8] sm:$0xff] %v447_v16  ;;  %v371_v18 = vpop.f32.mrf.mxu3 }
  0xc5   : > { %v382_v19 = vpop.f32.mrf.mxu0  ;;  %v395_v21 = vpop.f32.mrf.mxu1 }
  0xc6   : > { %v383_v20 = vadd.f32 %v382_v19, %v215_v62  ;;  %v396_v22 = vadd.f32 %v395_v21, %v215_v62 }
  0xc8   : > { %v429_v23 = vmax.f32 %v383_v20, 0.0  ;;  %v430_v24 = vmax.f32 %v396_v22, 0.0 }
  0xca   : > { %v443_v25 = vrot.slane %v430_v24, 4 }
  0xcc   : > { %v408_v26 = vpop.f32.mrf.mxu2  ;;  %v448_v27 = vsel %vm445_vm3, %v429_v23, %v443_v25  ;;  %v421_v28 = vpop.f32.mrf.mxu3 }
  0xcd   : > { %v384_v29 = vpop.f32.mrf.mxu0  ;;  %456 = vst [vmem:[%s965_s11 + $0x10] sm:$0xff] %v448_v27  ;;  %v409_v30 = vadd.f32 %v408_v26, %v215_v62  ;;  %v422_v31 = vadd.f32 %v421_v28, %v215_v62  ;;  %v397_v32 = vpop.f32.mrf.mxu1 }
  0xcf   : > { %v432_v33 = vmax.f32 %v422_v31, 0.0  ;;  %v431_v34 = vmax.f32 %v409_v30, 0.0 }
  0xd1   : > { %v444_v35 = vrot.slane %v432_v33, 4 }
  0xd3   : > { %v449_v36 = vsel %vm445_vm3, %v431_v34, %v444_v35 }
  0xd4   : > { %v410_v37 = vpop.f32.mrf.mxu2  ;;  %457 = vst [vmem:[%s965_s11 + $0x18] sm:$0xff] %v449_v36  ;;  %v423_v38 = vpop.f32.mrf.mxu3 }
  0xd5   : > { %758 = shalt.err (!%p755_p4)
}
  0xd6   : > { %651 = dma.vmem_to_hbm [thread:$0]  (%p873_p10), %s473_s27, 512, %s475_s16, %s459_s26  }
  0xd7 PF: > { %p662_p5 = scmp.ge.s32.totalorder %s797_s15, 2  ;;  %s486_s30 = sand.u32 1, %s785_s12  }
  0xd8   : > { %s487_s7 = scalar_lea.sflag [#allocation4], %s486_s30 }
  0xd9   : > { %p658_p7 = pnand %p662_p5, %p877_p11 }
  0xdb   : > { %p659_p8 = pneg %p658_p7 }
  0xdd   : > { %780 = dma.done.wait (%p659_p8), %s487_s7, 512  }
  0xde   : > { %782 = vsyncadd (%p659_p8), %s487_s7, 4294966784  ;;  %p16_p9 = scmp.ge.s32.totalorder %s849_s18, 10   ;;  %s1016_s12 = smov %s789_s13 }
  0xdf   : > { %s1017_s13 = smov %s793_s14  ;;  %s1018_s14 = smov %s861_s21 }
  0xe0   : > { %s1019_s15 = smov %s849_s18  ;;  %18 = sbr.rel (!%p16_p9) target bundleno = 5 (0x5), region = 77 }
  0xe5   :  { %493 = vsyncpa [#allocation3], 1 }
  0xe6   :  { %495 = vsyncpa [#allocation3 + $0x1], 1 }
  0xe7   :  { %496 = vsyncpa [#allocation4], 1 }
  0xe8   :  { %498 = vsyncpa [#allocation4 + $0x1], 1 }

</bundles_post_ra>
